<compile_context>
chip_gen: v7x
topology: tpu7x:2x2x1
jax: 0.10.0
libtpu: 0.0.40
codegen_flags: <defaults>
</compile_context>

<pallas_src>
import jax
import jax.numpy as jnp
from jax.experimental import pallas as pl
from jax.experimental.pallas import tpu as pltpu


def _round_up(n, m):
    return ((n + m - 1) // m) * m


# ---------------------------------------------------------------------------
# Pallas kernel: whole MLP fused, one batch tile per grid step.
# ---------------------------------------------------------------------------
def phinet_kernel(x_ref, w1_ref, b1_ref, w2_ref, b2_ref, w3_ref, b3_ref, o_ref):
    # Layer 1: Linear + ReLU (MXU matmul, f32 accumulation; bias/ReLU in f32).
    h1 = jnp.dot(x_ref[...], w1_ref[...],
                 preferred_element_type=jnp.float32) + b1_ref[...]
    h1 = jnp.maximum(h1, 0.0)

    # Layer 2: Linear + ReLU.
    h2 = jnp.dot(h1.astype(w2_ref.dtype), w2_ref[...],
                 preferred_element_type=jnp.float32) + b2_ref[...]
    h2 = jnp.maximum(h2, 0.0)                                   # (TILE_B, h) f32

    # Layer 3 (out_features == 1): contract over h with h2's batch dim becoming
    # the output lane dim, so the result is a lane-dense (1, TILE_B) row and the
    # store is an unmasked full-lane vst instead of a (TILE_B, 1) masked store.
    out_row = jax.lax.dot_general(
        w3_ref[...], h2, (((1,), (1,)), ((), ())),
        preferred_element_type=jnp.float32)                     # (1, TILE_B)
    o_ref[...] = (out_row + b3_ref[...]).astype(o_ref.dtype)


# ---------------------------------------------------------------------------
# Wrapper: batch grid, resident weights, bf16 inputs, lane-dense output.
# ---------------------------------------------------------------------------
def phinet_forward(x, params, *, compute_dtype=jnp.bfloat16, tile_b=None):
    """x: (B, F) float32 -> (B, 1) float32."""
    B, F = x.shape
    h = params["w1"].shape[1]

    # Batch tile: >=512 rows is already ~85% of HBM roofline; keep a multiple of
    # 16 so bf16 sublane packing is clean. Tiles stay tiny vs. VMEM everywhere.
    if tile_b is None:
        tile_b = 1024 if B >= 1024 else _round_up(max(B, 16), 16)
    tile_b = _round_up(tile_b, 16)
    b_pad = _round_up(B, tile_b)
    num_tiles = b_pad // tile_b

    if b_pad != B:
        x = jnp.pad(x, ((0, b_pad - B), (0, 0)))

    # bf16 x/weights halve HBM bytes; accumulation stays f32 inside the kernel.
    x_c = x.astype(compute_dtype)
    w1 = params["w1"].astype(compute_dtype)
    w2 = params["w2"].astype(compute_dtype)
    b1 = params["b1"].astype(jnp.float32)
    b2 = params["b2"].astype(jnp.float32)
    w3_row = params["w3"].reshape(1, h).astype(jnp.float32)
    b3 = params["b3"].reshape(1, 1).astype(jnp.float32)

    # Constant index_map => fetched once, resident in VMEM across grid steps.
    const = lambda a: pl.BlockSpec(a.shape, lambda i: (0, 0))

    flops = 2 * b_pad * (F * h + h * h + h)
    bytes_accessed = int(
        x_c.size * x_c.dtype.itemsize
        + w1.size * w1.dtype.itemsize
        + w2.size * w2.dtype.itemsize
        + (b1.size + b2.size + w3_row.size + b3.size) * 4
        + num_tiles * tile_b * 4)

    out = pl.pallas_call(
        phinet_kernel,
        out_shape=jax.ShapeDtypeStruct((num_tiles, tile_b), jnp.float32),
        grid_spec=pltpu.PrefetchScalarGridSpec(
            num_scalar_prefetch=0,
            grid=(num_tiles,),
            in_specs=[
                pl.BlockSpec((tile_b, F), lambda i: (i, 0)),    # x: batch-tiled
                const(w1), const(b1),                           # resident weights
                const(w2), const(b2),
                const(w3_row), const(b3),
            ],
            out_specs=pl.BlockSpec((1, tile_b), lambda i: (i, 0)),  # lane-dense
        ),
        compiler_params=pltpu.CompilerParams(
            dimension_semantics=("parallel",)),
        cost_estimate=pl.CostEstimate(
            flops=flops, transcendentals=0, bytes_accessed=bytes_accessed),
    )(x_c, w1, b1, w2, b2, w3_row, b3)

    # (num_tiles, tile_b) flattened row-major is exactly batch order.
    return out.reshape(-1)[:B].reshape(B, 1)


# ---------------------------------------------------------------------------
# Deterministic parameter init matching the PyTorch module:
#   weights: orthogonal with gain sqrt(2); biases: zeros.
# ---------------------------------------------------------------------------
def orthogonal_init(key, rows, cols, gain):
    """Semi-orthogonal (rows, cols) matrix, like nn.init.orthogonal_."""
    n, m = (rows, cols) if rows >= cols else (cols, rows)
    a = jax.random.normal(key, (n, m), dtype=jnp.float32)
    q, r = jnp.linalg.qr(a)
    q = q * jnp.sign(jnp.diagonal(r))[None, :]
    if rows < cols:
        q = q.T
    return gain * q[:rows, :cols]


def make_params(in_features, hidden_state_size, seed=0):
    h = hidden_state_size // 2
    gain = float(jnp.sqrt(2.0))
    k = jax.random.PRNGKey(seed)
    k1, k2, k3 = jax.random.split(k, 3)

    # torch Linear weight shapes: (out, in); we store transposed (in, out).
    w1 = orthogonal_init(k1, h, in_features, gain).T          # (in_features, h)
    w2 = orthogonal_init(k2, h, h, gain).T                    # (h, h)
    w3 = orthogonal_init(k3, 1, h, gain).T                    # (h, 1)

    return {
        "w1": jnp.asarray(w1, jnp.float32),
        "b1": jnp.zeros((1, h), jnp.float32),
        "w2": jnp.asarray(w2, jnp.float32),
        "b2": jnp.zeros((1, h), jnp.float32),
        "w3": jnp.asarray(w3, jnp.float32),
        "b3": jnp.zeros((1, 1), jnp.float32),
    }


def phinet_reference(x, params):
    """Plain-JAX reference for correctness checks."""
    h1 = jnp.maximum(x @ params["w1"] + params["b1"], 0.0)
    h2 = jnp.maximum(h1 @ params["w2"] + params["b2"], 0.0)
    return h2 @ params["w3"] + params["b3"]


if __name__ == "__main__":
    in_features_next_layer = 32
    hidden_state_size = 32   # -> hidden // 2 = 16
    batch = 8

    key = jax.random.PRNGKey(0)
    x = jax.random.normal(key, (batch, in_features_next_layer), dtype=jnp.float32)
    params = make_params(in_features_next_layer, hidden_state_size, seed=0)
    ref = phinet_reference(x, params)

    # 1) f32 compute path: should match the reference closely.
    out_f32 = jax.block_until_ready(
        phinet_forward(x, params, compute_dtype=jnp.float32))
    assert out_f32.shape == (batch, 1), out_f32.shape
    assert jnp.allclose(out_f32, ref, atol=1e-4, rtol=1e-4), \
        f"f32 max abs err {jnp.max(jnp.abs(out_f32 - ref))}"

    # 2) Default bf16-input path (halved HBM traffic, f32 accumulation).
    out_bf16 = jax.block_until_ready(phinet_forward(x, params))
    assert jnp.allclose(out_bf16, ref, atol=5e-2, rtol=5e-2), \
        f"bf16 max abs err {jnp.max(jnp.abs(out_bf16 - ref))}"

    # 3) Multi-tile batch grid (exercises pipelining + pad/trim logic).
    xb = jax.random.normal(jax.random.PRNGKey(1), (40, in_features_next_layer),
                           dtype=jnp.float32)
    out_mt = jax.block_until_ready(
        phinet_forward(xb, params, compute_dtype=jnp.float32, tile_b=16))
    refb = phinet_reference(xb, params)
    assert out_mt.shape == (40, 1), out_mt.shape
    assert jnp.allclose(out_mt, refb, atol=1e-4, rtol=1e-4), \
        f"grid max abs err {jnp.max(jnp.abs(out_mt - refb))}"

    print("KERNEL_OK")
</pallas_src>

<mosaic_0001>
module attributes {stable_mosaic.version = 11 : i64} {
  func.func @phinet_kernel(%arg0: i32, %arg1: memref<16x32xf32, #tpu.memory_space<vmem>>, %arg2: memref<32x16xf32, #tpu.memory_space<vmem>>, %arg3: memref<1x16xf32, #tpu.memory_space<vmem>>, %arg4: memref<16x16xf32, #tpu.memory_space<vmem>>, %arg5: memref<1x16xf32, #tpu.memory_space<vmem>>, %arg6: memref<1x16xf32, #tpu.memory_space<vmem>>, %arg7: memref<1x1xf32, #tpu.memory_space<vmem>>, %arg8: memref<1x16xf32, #tpu.memory_space<vmem>>) attributes {dimension_semantics = [#tpu.dimension_semantics<parallel>], iteration_bounds = array<i64: 1>, scalar_prefetch = 0 : i64, scratch_operands = 0 : i64, tpu.core_type = #tpu.core_type<tc>, window_params = [{transform_indices = @transform_0, window_bounds = array<i64: 16, 32>}, {pipeline_mode = #tpu.pipeline_mode<synchronous>, transform_indices = @transform_1, window_bounds = array<i64: 32, 16>}, {pipeline_mode = #tpu.pipeline_mode<synchronous>, transform_indices = @transform_2, window_bounds = array<i64: 1, 16>}, {pipeline_mode = #tpu.pipeline_mode<synchronous>, transform_indices = @transform_3, window_bounds = array<i64: 16, 16>}, {pipeline_mode = #tpu.pipeline_mode<synchronous>, transform_indices = @transform_4, window_bounds = array<i64: 1, 16>}, {pipeline_mode = #tpu.pipeline_mode<synchronous>, transform_indices = @transform_5, window_bounds = array<i64: 1, 16>}, {pipeline_mode = #tpu.pipeline_mode<synchronous>, transform_indices = @transform_6, window_bounds = array<i64: 1, 1>}, {transform_indices = @transform_7, window_bounds = array<i64: 1, 16>}]} {
    %c0 = arith.constant 0 : index
    %c0_0 = arith.constant 0 : index
    %0 = vector.load %arg1[%c0, %c0_0] : memref<16x32xf32, #tpu.memory_space<vmem>>, vector<16x32xf32>
    %c0_1 = arith.constant 0 : index
    %c0_2 = arith.constant 0 : index
    %1 = vector.load %arg2[%c0_1, %c0_2] : memref<32x16xf32, #tpu.memory_space<vmem>>, vector<32x16xf32>
    %cst = arith.constant dense<0.000000e+00> : vector<16x16xf32>
    %2 = tpu.matmul %0, %1, %cst {dimension_numbers = #tpu.dot_dimension_numbers<[1], [0], [0], [1], [0, 0, 1, 1], [], []>} : vector<16x32xf32>, vector<32x16xf32>, vector<16x16xf32> -> vector<16x16xf32>
    %c0_3 = arith.constant 0 : index
    %c0_4 = arith.constant 0 : index
    %3 = vector.load %arg3[%c0_3, %c0_4] : memref<1x16xf32, #tpu.memory_space<vmem>>, vector<1x16xf32>
    %4 = vector.broadcast %3 : vector<1x16xf32> to vector<16x16xf32>
    %5 = arith.addf %2, %4 : vector<16x16xf32>
    %cst_5 = arith.constant 0.000000e+00 : f32
    %6 = vector.broadcast %cst_5 : f32 to vector<16x16xf32>
    %7 = arith.maximumf %5, %6 : vector<16x16xf32>
    %c0_6 = arith.constant 0 : index
    %c0_7 = arith.constant 0 : index
    %8 = vector.load %arg4[%c0_6, %c0_7] : memref<16x16xf32, #tpu.memory_space<vmem>>, vector<16x16xf32>
    %cst_8 = arith.constant dense<0.000000e+00> : vector<16x16xf32>
    %9 = tpu.matmul %7, %8, %cst_8 {dimension_numbers = #tpu.dot_dimension_numbers<[1], [0], [0], [1], [0, 0, 1, 1], [], []>} : vector<16x16xf32>, vector<16x16xf32>, vector<16x16xf32> -> vector<16x16xf32>
    %c0_9 = arith.constant 0 : index
    %c0_10 = arith.constant 0 : index
    %10 = vector.load %arg5[%c0_9, %c0_10] : memref<1x16xf32, #tpu.memory_space<vmem>>, vector<1x16xf32>
    %11 = vector.broadcast %10 : vector<1x16xf32> to vector<16x16xf32>
    %12 = arith.addf %9, %11 : vector<16x16xf32>
    %cst_11 = arith.constant 0.000000e+00 : f32
    %13 = vector.broadcast %cst_11 : f32 to vector<16x16xf32>
    %14 = arith.maximumf %12, %13 : vector<16x16xf32>
    %c0_12 = arith.constant 0 : index
    %c0_13 = arith.constant 0 : index
    %15 = vector.load %arg6[%c0_12, %c0_13] : memref<1x16xf32, #tpu.memory_space<vmem>>, vector<1x16xf32>
    %cst_14 = arith.constant dense<0.000000e+00> : vector<1x16xf32>
    %16 = tpu.matmul %15, %14, %cst_14 {dimension_numbers = #tpu.dot_dimension_numbers<[1], [1], [0], [0], [0, 0, 1, 0], [], []>} : vector<1x16xf32>, vector<16x16xf32>, vector<1x16xf32> -> vector<1x16xf32>
    %c0_15 = arith.constant 0 : index
    %c0_16 = arith.constant 0 : index
    %17 = vector.load %arg7[%c0_15, %c0_16] : memref<1x1xf32, #tpu.memory_space<vmem>>, vector<1x1xf32>
    %18 = vector.broadcast %17 : vector<1x1xf32> to vector<1x16xf32>
    %19 = arith.addf %16, %18 : vector<1x16xf32>
    %c0_17 = arith.constant 0 : index
    %c0_18 = arith.constant 0 : index
    %20 = vector.load %arg8[%c0_17, %c0_18] : memref<1x16xf32, #tpu.memory_space<vmem>>, vector<1x16xf32>
    tpu.vector_store %arg8[%c0_17, %c0_18], %19 {strides = array<i32>} : memref<1x16xf32, #tpu.memory_space<vmem>>, vector<1x16xf32>,
    return
  }
  func.func @transform_0(%arg0: i32) -> (i32, i32) {
    %c0_i32 = arith.constant 0 : i32
    %c0_i32_0 = arith.constant 0 : i32
    return %arg0, %c0_i32 : i32, i32
  }
  func.func @transform_1(%arg0: i32) -> (i32, i32) {
    %c0_i32 = arith.constant 0 : i32
    %c0_i32_0 = arith.constant 0 : i32
    %c0_i32_1 = arith.constant 0 : i32
    return %c0_i32, %c0_i32_0 : i32, i32
  }
  func.func @transform_2(%arg0: i32) -> (i32, i32) {
    %c0_i32 = arith.constant 0 : i32
    %c0_i32_0 = arith.constant 0 : i32
    %c0_i32_1 = arith.constant 0 : i32
    return %c0_i32, %c0_i32_0 : i32, i32
  }
  func.func @transform_3(%arg0: i32) -> (i32, i32) {
    %c0_i32 = arith.constant 0 : i32
    %c0_i32_0 = arith.constant 0 : i32
    %c0_i32_1 = arith.constant 0 : i32
    return %c0_i32, %c0_i32_0 : i32, i32
  }
  func.func @transform_4(%arg0: i32) -> (i32, i32) {
    %c0_i32 = arith.constant 0 : i32
    %c0_i32_0 = arith.constant 0 : i32
    %c0_i32_1 = arith.constant 0 : i32
    return %c0_i32, %c0_i32_0 : i32, i32
  }
  func.func @transform_5(%arg0: i32) -> (i32, i32) {
    %c0_i32 = arith.constant 0 : i32
    %c0_i32_0 = arith.constant 0 : i32
    %c0_i32_1 = arith.constant 0 : i32
    return %c0_i32, %c0_i32_0 : i32, i32
  }
  func.func @transform_6(%arg0: i32) -> (i32, i32) {
    %c0_i32 = arith.constant 0 : i32
    %c0_i32_0 = arith.constant 0 : i32
    %c0_i32_1 = arith.constant 0 : i32
    return %c0_i32, %c0_i32_0 : i32, i32
  }
  func.func @transform_7(%arg0: i32) -> (i32, i32) {
    %c0_i32 = arith.constant 0 : i32
    %c0_i32_0 = arith.constant 0 : i32
    return %arg0, %c0_i32 : i32, i32
  }
}

</mosaic_0001>

<bundles_post_ra>
// kernel: tpu_custom_call.1
= control target key start
LH: loop header
LB: loop body
LE: loop exit
PB: predicated region body
PF: predicated region fallthrough
CT: control target
= control target key end

     0   :  { %s516_s0 = inlined_call_operand.vmem [shape: f32[16,32], index: 0, kind: input, shape index: {}]   ;;  %s517_s1 = inlined_call_operand.vmem [shape: f32[32,16], index: 1, kind: input, shape index: {}]   ;;  %s518_s2 = inlined_call_operand.vmem [shape: f32[1,16], index: 2, kind: input, shape index: {}]   ;;  %s519_s3 = inlined_call_operand.vmem [shape: f32[16,16], index: 3, kind: input, shape index: {}]   ;;  %s520_s4 = inlined_call_operand.vmem [shape: f32[1,16], index: 4, kind: input, shape index: {}]   ;;  %s521_s5 = inlined_call_operand.vmem [shape: f32[1,16], index: 5, kind: input, shape index: {}]   ;;  %s522_s6 = inlined_call_operand.<no memory space> [shape: f32[1,1], index: 6, kind: input, shape index: {}]   ;;  %s523_s7 = inlined_call_operand.hbm [shape: f32[1,16], index: 7, kind: output, shape index: {}]  }
   0x1   :  { %v12_v0 = vstv %s522_s6 }
   0x2   :  { %13 = vst [vmem:[#allocation2] sm:$0x1] %v12_v0 }
   0x3   :  { %v31_v1 = vld [vmem:[%s517_s1] sm:$0xff]  ;;  %v32_v2 = vld [vmem:[%s517_s1 + $0x8] sm:$0xff]  ;;  %v33_v3 = vld [vmem:[%s517_s1 + $0x10] sm:$0xff]  ;;  %vm42_vm0 = vcmask 261120  }
   0x4   :  { %v372_v4 = vpack.c.bf16 %v32_v2, %v31_v1  ;;  %v34_v5 = vld [vmem:[%s517_s1 + $0x18] sm:$0xff]  ;;  %v29_v6 = vld [vmem:[%s516_s0] sm:$0xff] }
   0x5   :  { %v376_v7 = vpack.c.bf16 %v34_v5, %v33_v3  ;;  %355 = vmatprep.mubr.msk.f32.mxu0 %vm42_vm0, %v29_v6 }
   0x6   :  { %14 = vsyncpa [#allocation4], 0  ;;  %373 = vmatprep.subr.bf16.mxu0 %v372_v4  ;;  %v30_v8 = vld [vmem:[%s516_s0 + $0x8] sm:$0xff]  ;;  %v126_v9 = vld [vmem:[%s519_s3] sm:$0xff]  ;;  %vm135_vm1 = vcmask 130048   ;;  %v418_v19 = vmov 0.0|0.0   ;;  %v226_v32 = vlaneseq }
   0x7   :  { %375 = vmatpush3.bf16.msra.mxu0 %v372_v4  ;;  %v127_v10 = vld [vmem:[%s519_s3 + $0x8] sm:$0xff]  ;;  %v325_v12 = vld [vmem:[%s518_s2] ss:$0 sm:$0xff]  ;;  %vm419_vm2 = vmmov 0   ;;  %v420_v20 = vmov 0.0   ;;  %v421_v22 = vmov 0   ;;  %vm386_vm3 = vmpackc.low %vm135_vm1, %vm135_vm1 }
   0x8   :  { %377 = vmatprep.subr.bf16.mxu0 %v376_v7  ;;  %v380_v11 = vpack.c.bf16 %v127_v10, %v126_v9  ;;  %393 = vset.pattern.permute.xlu0 %v421_v22  ;;  %v328_v23 = vld [vmem:[%s520_s4] ss:$0 sm:$0xff]  ;;  %v227_v33 = vshrl.u32 %v226_v32, 7  ;;  %s422_s4 = smov [#allocation3]   ;;  %vm309_vm4 = vcmask 122880  }
   0x9   :  { %v220_v21 = vld [vmem:[#allocation2] sm:$0x1]  ;;  %s317_s20 = sshll.u32 %s422_s4, 4  ;;  %s318_s20 = int_to_ptr.vmem [resolvable:$true] %s317_s20 }
   0xa   :  { %381 = vmatprep.subr.bf16.mxu1 %v380_v11  ;;  %223 = vperm.xlu0 %393, %v220_v21   ;;  %v219_v31 = vld [vmem:[%s521_s5] sm:$0x1]  ;;  %v228_v34 = vsub.s32 0, %v227_v33  ;;  %s394_s21 = scalar_lea.vmem %s318_s20, 16  ;;  %s398_s22 = scalar_lea.vmem %s318_s20, 32 }
   0xb   :  { %379 = vmatpush3.bf16.msra.mxu0 %v376_v7  ;;  %383 = vmatpush3.bf16.msra.mxu1 %v380_v11  ;;  %p395_p0 = scmp.ne.s32.totalorder %s318_s20, %s394_s21  ;;  %p399_p1 = scmp.lt.s32.totalorder %s318_s20, %s318_s20 }
   0xc   :  { %384 = vmatprep.subr.bf16.mxu1 %v418_v19  ;;  %p400_p2 = scmp.lt.s32.totalorder %s398_s22, %s394_s21 }
   0xe   :  { %356 = vmatmul.mubr.msk.f32.vlgmr.msra.gmra.mrb[0].mxu0 %vm42_vm0, %v30_v8  ;;  %p401_p3 = por %p400_p2, %p399_p1 }
  0x10   :  { %p402_p4 = pnand %p401_p3, %p395_p0 }
  0x89   :  { %v224_v35 = vpop.permute.xlu0 %223 }
  0x8a   :  { %v229_v36 = vrot.slane %v224_v35, %v228_v34 }
  0xe1   :  { %v357_v13 = vpop.f32.mrb[0].mxu0 }
  0xe2   :  { %v121_v14 = vadd.f32 %v357_v13, %v325_v12  ;;  %v115_v15 = vpop.f32.mrb[1].mxu0 }
  0xe3   :  { %v116_v16 = vadd.f32 %v325_v12, %v115_v15 }
  0xe4   :  { %v125_v18 = vmax.f32 %v121_v14, 0.0 }
  0xe5   :  { %v124_v17 = vmax.f32 %v116_v16, 0.0 }
  0xe7   :  { %362 = vmatprep.mubr.msk.f32.mxu1 %vm135_vm1, %v124_v17 }
  0xe8   :  { %363 = vmatmul.mubr.msk.f32.vlgmr.msra.gmra.mrb[0].mxu1 %vm135_vm1, %v125_v18 }
  0xe9   :  { %369 = vmatprep.mubr.msk.f32.mxu1 %vm419_vm2, %v420_v20 }
 0x1bb   :  { %v364_v24 = vpop.f32.mrb[0].mxu1 }
 0x1bc   :  { %v214_v25 = vadd.f32 %v364_v24, %v328_v23  ;;  %v208_v26 = vpop.f32.mrb[1].mxu1 }
 0x1bd   :  { %v209_v27 = vadd.f32 %v328_v23, %v208_v26 }
 0x1be   :  { %v218_v28 = vmax.f32 %v214_v25, 0.0 }
 0x1bf   :  { %v217_v29 = vmax.f32 %v209_v27, 0.0 }
 0x1c1   :  { %v385_v30 = vpack.c.bf16 %v218_v28, %v217_v29 }
 0x1c3   :  { %387 = vmatpush3.bf16.xpose.msk.msra.mxu1 %vm386_vm3, %v385_v30 }
 0x1ca   :  { %370 = vmatmul.mubr.msk.f32.vlgmr.msra.gmra.mrb[2].mxu1 %vm135_vm1, %v219_v31 }
 0x29d   :  { %v305_v37 = vpop.f32.mrb[2].mxu1 }
 0x29e   :  { %v306_v38 = vadd.f32 %v305_v37, %v229_v36  ;;  %v371_v39 = vpop.f32.mrb[3].mxu1 }
 0x2a0   :  { %310 = vst.msk [vmem:[#allocation3] sm:$0x1] %vm309_vm4, %v306_v38 }
 0x2a1   :  { %405 = shalt.err (!%p402_p4)
}
 0x2a2   :  { %s406_s24 = scalar_lea.hbm %s523_s7, 16 }
 0x2a3   :  { %p407_p5 = scmp.ne.s32.totalorder %s523_s7, %s406_s24  ;;  %p410_p6 = scmp.lt.u32.totalorder %s406_s24, %s523_s7 }
 0x2a5   :  { %p412_p7 = pnand %p410_p6, %p407_p5 }
 0x2a7   :  { %415 = shalt.err (!%p412_p7)
}
 0x2a8   :  { %320 = dma.vmem_to_hbm [thread:$0]  %s318_s20, 16, %s523_s7, [#allocation4]  }
 0x2a9   :  { %416 = dma.done.wait [#allocation4], 16  }
 0x2aa   :  { %417 = vsyncadd [#allocation4], 4294967280 }
 0x2ab   :  { %324 = vsyncpa [#allocation4], 1 }

</bundles_post_ra>
